<compile_context>
chip_gen: v7x
topology: tpu7x:2x2x1
jax: 0.10.0
libtpu: 0.0.40
codegen_flags: <defaults>
</compile_context>

<pallas_src>
import functools

import jax
import jax.numpy as jnp
from jax import lax
from jax.experimental import pallas as pl
from jax.experimental.pallas import tpu as pltpu

LN_EPS = 1e-5                              # PyTorch nn.LayerNorm default eps
DROP_P = 0.1                               # nn.Dropout(0.1)
# int() truncates: drop prob ~0.0999999964 instead of exactly 0.1 (negligible)
_DROP_THRESH = int(DROP_P * (1 << 24))
_KEEP_SCALE = 1.0 / (1.0 - DROP_P)


def _vmem_params():
    """Generation-aware (block_budget_bytes, vmem_limit_bytes, max_row_tile)."""
    try:
        cap = pltpu.get_tpu_info().vmem_capacity_bytes
    except Exception:
        cap = 64 << 20                      # unknown backend -> be conservative
    if cap >= (100 << 20):                  # v5e / v6e: 128 MiB physical VMEM
        return 24 << 20, 64 << 20, 1024
    # v7x (64 MiB per TensorCore) or unknown: keep headroom for f32 temps
    return 10 << 20, 40 << 20, 512


def _addnorm_kernel(*refs, fold: bool, training: bool):
    """refs = (h, c, gamma, beta, [avg_mat if fold], [bits if training], out)."""
    h_ref, c_ref, g_ref, b_ref = refs[:4]
    i = 4
    m_ref = None
    bits_ref = None
    if fold:
        m_ref = refs[i]; i += 1
    if training:
        bits_ref = refs[i]; i += 1
    out_ref = refs[i]

    x = h_ref[...].astype(jnp.float32) + c_ref[...].astype(jnp.float32)

    if training:
        # Inverted dropout on the residual sum (matches torch:
        # dropout(history + current)).  TODO(synk): mask cannot bit-match
        # torch's RNG stream.
        keep = (bits_ref[...] & jnp.uint32(0x00FFFFFF)) >= jnp.uint32(_DROP_THRESH)
        x = jnp.where(keep, x * _KEEP_SCALE, 0.0)

    if fold:
        # Segmented per-H-group reduction via block-diagonal averaging matmul.
        # Two back-to-back matmuls (no MXU->VPU->MXU dependency chain).
        m = m_ref[...]                                       # (L, L), 1/H blocks
        s1 = jnp.dot(x, m, preferred_element_type=jnp.float32)       # E[x]
        s2 = jnp.dot(x * x, m, preferred_element_type=jnp.float32)   # E[x^2]
    else:
        inv_h = 1.0 / x.shape[-1]
        s1 = jnp.sum(x, axis=-1, keepdims=True) * inv_h
        s2 = jnp.sum(x * x, axis=-1, keepdims=True) * inv_h

    mean = s1
    var = s2 - mean * mean          # E[x^2] - mean^2 (see cancellation note)
    inv = lax.rsqrt(var + LN_EPS)
    y = (x - mean) * inv * g_ref[...] + b_ref[...]
    out_ref[...] = y.astype(out_ref.dtype)


def add_norm(history, current, gamma, beta, *, training: bool = False,
             seed: int = 0, row_tile: int | None = None):
    assert history.shape == current.shape
    B, S, H = history.shape
    assert gamma.shape == (H,) and beta.shape == (H,)

    R = B * S
    io_dtype = history.dtype
    itemsize = jnp.dtype(io_dtype).itemsize

    # Lane folding: pack k rows per slab-row so the last dim is exactly 128.
    fold = (H < 128) and (128 % H == 0)
    k = (128 // H) if fold else 1
    L = k * H

    h2 = history.reshape(R, H)
    c2 = current.reshape(R, H)
    pad_rows = ((-R) % k) if fold else 0
    if pad_rows:
        # Only <= k-1 rows, only when R is not a multiple of k (per review).
        h2 = jnp.pad(h2, ((0, pad_rows), (0, 0)))
        c2 = jnp.pad(c2, ((0, pad_rows), (0, 0)))
    R_pad = R + pad_rows
    rows = R_pad // k
    h2 = h2.reshape(rows, L)                  # contiguous reshape: free
    c2 = c2.reshape(rows, L)

    # --- row_tile auto-size (honest about f32 temps + dropout bits) ---------
    block_budget, vmem_limit, max_tile = _vmem_params()
    bits_bytes = 8 if training else 0         # uint32 stream, double-buffered
    temps_bytes = 20 if training else 16      # live f32 intermediates per elem
    per_row = (3 * 2 * itemsize + bits_bytes + temps_bytes) * L
    if row_tile is None:
        row_tile = max(8, min(max_tile, block_budget // per_row))
    row_tile = max(8, (int(row_tile) // 8) * 8)
    rows8 = ((rows + 7) // 8) * 8
    row_tile = min(row_tile, rows8)
    if rows < 8:
        row_tile = rows                        # full extent: always legal
    elif rows > row_tile:
        # Prefer an even grid-step count: v7x's 2 TensorCores split the
        # parallel axis; neutral on single-core v5e/v6e.
        n_pairs = -(-rows // (2 * row_tile))
        even_tile = ((-(-rows // (2 * n_pairs))) + 7) // 8 * 8
        row_tile = min(row_tile, max(8, even_tile))
    n_tiles = pl.cdiv(rows, row_tile)          # ragged last block: masked

    # --- operands ------------------------------------------------------------
    g2 = jnp.tile(gamma.astype(jnp.float32), k).reshape(1, L)
    b2 = jnp.tile(beta.astype(jnp.float32), k).reshape(1, L)

    row_spec = pl.BlockSpec((row_tile, L), lambda i: (i, 0))
    vec_spec = pl.BlockSpec((1, L), lambda i: (0, 0))

    operands = [h2, c2, g2, b2]
    in_specs = [row_spec, row_spec, vec_spec, vec_spec]

    if fold:
        grp = jnp.arange(L, dtype=jnp.int32) // H
        mmat = jnp.where(grp[:, None] == grp[None, :],
                         1.0 / H, 0.0).astype(jnp.float32)
        operands.append(mmat)
        in_specs.append(pl.BlockSpec((L, L), lambda i: (0, 0)))

    if training:
        bits = jax.random.bits(jax.random.PRNGKey(seed), (rows, L),
                               dtype=jnp.uint32)
        operands.append(bits)
        in_specs.append(pl.BlockSpec((row_tile, L), lambda i: (i, 0)))

    kernel = functools.partial(_addnorm_kernel, fold=fold, training=training)

    out2 = pl.pallas_call(
        kernel,
        out_shape=jax.ShapeDtypeStruct((rows, L), io_dtype),
        grid=(n_tiles,),
        in_specs=in_specs,
        out_specs=row_spec,
        compiler_params=pltpu.CompilerParams(
            dimension_semantics=("parallel",),
            vmem_limit_bytes=vmem_limit),
    )(*operands)

    out = out2.reshape(R_pad, H)
    if pad_rows:
        out = out[:R]
    return out.reshape(B, S, H)


def _layernorm_ref(x, gamma, beta):
    mean = jnp.mean(x, axis=-1, keepdims=True)
    var = jnp.mean((x - mean) ** 2, axis=-1, keepdims=True)
    return (x - mean) * lax.rsqrt(var + LN_EPS) * gamma + beta


if __name__ == "__main__":
    # Shapes implied by the forward: (batch, seq, embeddingNum)
    B, S, H = 2, 8, 32

    key = jax.random.PRNGKey(0)
    k1, k2, k3, k4 = jax.random.split(key, 4)
    history = jax.random.normal(k1, (B, S, H), dtype=jnp.float32)
    current = jax.random.normal(k2, (B, S, H), dtype=jnp.float32)

    # LayerNorm params matching PyTorch init: weight=1, bias=0
    gamma = jnp.ones((H,), dtype=jnp.float32)
    beta = jnp.zeros((H,), dtype=jnp.float32)

    # --- eval-mode forward (dropout is identity, as in PyTorch .eval()) -----
    out = add_norm(history, current, gamma, beta, training=False)
    out = jax.block_until_ready(out)
    ref = _layernorm_ref(history + current, gamma, beta)
    assert jnp.allclose(out, ref, atol=1e-5, rtol=1e-5)

    # --- also exercise the row-wise (H >= 128) path --------------------------
    H2 = 128
    hist2 = jax.random.normal(k3, (B, S, H2), dtype=jnp.float32)
    curr2 = jax.random.normal(k4, (B, S, H2), dtype=jnp.float32)
    gamma2 = jnp.ones((H2,), dtype=jnp.float32)
    beta2 = jnp.zeros((H2,), dtype=jnp.float32)
    out2 = add_norm(hist2, curr2, gamma2, beta2, training=False)
    out2 = jax.block_until_ready(out2)
    ref2 = _layernorm_ref(hist2 + curr2, gamma2, beta2)
    assert jnp.allclose(out2, ref2, atol=1e-5, rtol=1e-5)

    # --- train-mode forward exercises the host-RNG dropout path -------------
    out_tr = add_norm(history, current, gamma, beta, training=True, seed=123)
    out_tr = jax.block_until_ready(out_tr)
    assert out_tr.shape == (B, S, H)
    assert bool(jnp.all(jnp.isfinite(out_tr)))

    print("KERNEL_OK")
</pallas_src>

<mosaic_0001>
module attributes {stable_mosaic.version = 11 : i64} {
  func.func @_addnorm_kernel(%arg0: i32, %arg1: memref<4x128xf32, #tpu.memory_space<vmem>>, %arg2: memref<4x128xf32, #tpu.memory_space<vmem>>, %arg3: memref<1x128xf32, #tpu.memory_space<vmem>>, %arg4: memref<1x128xf32, #tpu.memory_space<vmem>>, %arg5: memref<128x128xf32, #tpu.memory_space<vmem>>, %arg6: memref<4x128xf32, #tpu.memory_space<vmem>>) attributes {dimension_semantics = [#tpu.dimension_semantics<parallel>], iteration_bounds = array<i64: 1>, scalar_prefetch = 0 : i64, scratch_operands = 0 : i64, tpu.core_type = #tpu.core_type<tc>, window_params = [{transform_indices = @transform_0, window_bounds = array<i64: 4, 128>}, {transform_indices = @transform_1, window_bounds = array<i64: 4, 128>}, {pipeline_mode = #tpu.pipeline_mode<synchronous>, transform_indices = @transform_2, window_bounds = array<i64: 1, 128>}, {pipeline_mode = #tpu.pipeline_mode<synchronous>, transform_indices = @transform_3, window_bounds = array<i64: 1, 128>}, {pipeline_mode = #tpu.pipeline_mode<synchronous>, transform_indices = @transform_4, window_bounds = array<i64: 128, 128>}, {transform_indices = @transform_5, window_bounds = array<i64: 4, 128>}]} {
    %c0 = arith.constant 0 : index
    %c0_0 = arith.constant 0 : index
    %0 = vector.load %arg1[%c0, %c0_0] : memref<4x128xf32, #tpu.memory_space<vmem>>, vector<4x128xf32>
    %c0_1 = arith.constant 0 : index
    %c0_2 = arith.constant 0 : index
    %1 = vector.load %arg2[%c0_1, %c0_2] : memref<4x128xf32, #tpu.memory_space<vmem>>, vector<4x128xf32>
    %2 = arith.addf %0, %1 : vector<4x128xf32>
    %c0_3 = arith.constant 0 : index
    %c0_4 = arith.constant 0 : index
    %3 = vector.load %arg5[%c0_3, %c0_4] : memref<128x128xf32, #tpu.memory_space<vmem>>, vector<128x128xf32>
    %cst = arith.constant dense<0.000000e+00> : vector<4x128xf32>
    %4 = tpu.matmul %2, %3, %cst {dimension_numbers = #tpu.dot_dimension_numbers<[1], [0], [0], [1], [0, 0, 1, 1], [], []>} : vector<4x128xf32>, vector<128x128xf32>, vector<4x128xf32> -> vector<4x128xf32>
    %5 = arith.mulf %2, %2 : vector<4x128xf32>
    %cst_5 = arith.constant dense<0.000000e+00> : vector<4x128xf32>
    %6 = tpu.matmul %5, %3, %cst_5 {dimension_numbers = #tpu.dot_dimension_numbers<[1], [0], [0], [1], [0, 0, 1, 1], [], []>} : vector<4x128xf32>, vector<128x128xf32>, vector<4x128xf32> -> vector<4x128xf32>
    %7 = arith.mulf %4, %4 : vector<4x128xf32>
    %8 = arith.subf %6, %7 : vector<4x128xf32>
    %cst_6 = arith.constant 9.99999974E-6 : f32
    %9 = vector.broadcast %cst_6 : f32 to vector<4x128xf32>
    %10 = arith.addf %8, %9 : vector<4x128xf32>
    %11 = math.rsqrt %10 : vector<4x128xf32>
    %12 = arith.subf %2, %4 : vector<4x128xf32>
    %13 = arith.mulf %12, %11 : vector<4x128xf32>
    %c0_7 = arith.constant 0 : index
    %c0_8 = arith.constant 0 : index
    %14 = vector.load %arg3[%c0_7, %c0_8] : memref<1x128xf32, #tpu.memory_space<vmem>>, vector<1x128xf32>
    %15 = vector.broadcast %14 : vector<1x128xf32> to vector<4x128xf32>
    %16 = arith.mulf %13, %15 : vector<4x128xf32>
    %c0_9 = arith.constant 0 : index
    %c0_10 = arith.constant 0 : index
    %17 = vector.load %arg4[%c0_9, %c0_10] : memref<1x128xf32, #tpu.memory_space<vmem>>, vector<1x128xf32>
    %18 = vector.broadcast %17 : vector<1x128xf32> to vector<4x128xf32>
    %19 = arith.addf %16, %18 : vector<4x128xf32>
    %c0_11 = arith.constant 0 : index
    %c0_12 = arith.constant 0 : index
    %20 = vector.load %arg6[%c0_11, %c0_12] : memref<4x128xf32, #tpu.memory_space<vmem>>, vector<4x128xf32>
    tpu.vector_store %arg6[%c0_11, %c0_12], %19 {strides = array<i32>} : memref<4x128xf32, #tpu.memory_space<vmem>>, vector<4x128xf32>,
    return
  }
  func.func @transform_0(%arg0: i32) -> (i32, i32) {
    %c0_i32 = arith.constant 0 : i32
    %c0_i32_0 = arith.constant 0 : i32
    return %arg0, %c0_i32 : i32, i32
  }
  func.func @transform_1(%arg0: i32) -> (i32, i32) {
    %c0_i32 = arith.constant 0 : i32
    %c0_i32_0 = arith.constant 0 : i32
    return %arg0, %c0_i32 : i32, i32
  }
  func.func @transform_2(%arg0: i32) -> (i32, i32) {
    %c0_i32 = arith.constant 0 : i32
    %c0_i32_0 = arith.constant 0 : i32
    %c0_i32_1 = arith.constant 0 : i32
    return %c0_i32, %c0_i32_0 : i32, i32
  }
  func.func @transform_3(%arg0: i32) -> (i32, i32) {
    %c0_i32 = arith.constant 0 : i32
    %c0_i32_0 = arith.constant 0 : i32
    %c0_i32_1 = arith.constant 0 : i32
    return %c0_i32, %c0_i32_0 : i32, i32
  }
  func.func @transform_4(%arg0: i32) -> (i32, i32) {
    %c0_i32 = arith.constant 0 : i32
    %c0_i32_0 = arith.constant 0 : i32
    %c0_i32_1 = arith.constant 0 : i32
    return %c0_i32, %c0_i32_0 : i32, i32
  }
  func.func @transform_5(%arg0: i32) -> (i32, i32) {
    %c0_i32 = arith.constant 0 : i32
    %c0_i32_0 = arith.constant 0 : i32
    return %arg0, %c0_i32 : i32, i32
  }
}

</mosaic_0001>

<bundles_post_ra>
// kernel: tpu_custom_call.1
= control target key start
LH: loop header
LB: loop body
LE: loop exit
PB: predicated region body
PF: predicated region fallthrough
CT: control target
= control target key end

     0   :  { %10 = vsyncpa [#allocation3], 0  ;;  %s609_s0 = inlined_call_operand.hbm [shape: f32[4,128], index: 0, kind: input, shape index: {}]   ;;  %s610_s1 = inlined_call_operand.hbm [shape: f32[4,128], index: 1, kind: input, shape index: {}]   ;;  %s611_s2 = inlined_call_operand.vmem [shape: f32[1,128], index: 2, kind: input, shape index: {}]   ;;  %s612_s3 = inlined_call_operand.vmem [shape: f32[1,128], index: 3, kind: input, shape index: {}]   ;;  %s613_s4 = inlined_call_operand.hbm [shape: f32[128,128], index: 4, kind: input, shape index: {}]   ;;  %s614_s5 = inlined_call_operand.hbm [shape: f32[4,128], index: 5, kind: output, shape index: {}]  }
   0x1   :  { %11 = vsyncpa [#allocation6], 0 }
   0x2   :  { %12 = vsyncpa [#allocation4], 0  ;;  %s516_s18 = smov [#allocation5]   ;;  %s517_s20 = smov [#allocation2]  }
   0x3   :  { %s29_s19 = sshll.u32 %s516_s18, 4  ;;  %s19_s21 = sshll.u32 %s517_s20, 4  ;;  %s30_s19 = int_to_ptr.vmem [resolvable:$true] %s29_s19  ;;  %s20_s21 = int_to_ptr.vmem [resolvable:$true] %s19_s21 }
   0x4   :  { %s422_s24 = scalar_lea.hbm %s610_s1, 64 }
   0x5   :  { %p423_p0 = scmp.ne.s32.totalorder %s610_s1, %s422_s24  ;;  %p426_p1 = scmp.lt.u32.totalorder %s422_s24, %s610_s1 }
   0x7   :  { %p428_p2 = pnand %p426_p1, %p423_p0 }
   0x9   :  { %431 = shalt.err (!%p428_p2)
}
   0xa   :  { %s432_s29 = scalar_lea.vmem %s30_s19, 64  ;;  %p437_p4 = scmp.lt.s32.totalorder %s30_s19, %s30_s19 }
   0xb   :  { %p433_p3 = scmp.ne.s32.totalorder %s30_s19, %s432_s29  ;;  %p438_p5 = scmp.lt.s32.totalorder %s432_s29, %s432_s29 }
   0xd   :  { %p439_p6 = por %p438_p5, %p437_p4 }
   0xf   :  { %p440_p7 = pnand %p439_p6, %p433_p3 }
  0x11   :  { %443 = shalt.err (!%p440_p7)
}
  0x12   :  { %32 = dma.hbm_to_vmem [thread:$0]  %s610_s1, 64, %s30_s19, [#allocation6]  }
  0x13   :  { %s444_s9 = scalar_lea.hbm %s609_s0, 64 }
  0x14   :  { %p445_p8 = scmp.ne.s32.totalorder %s609_s0, %s444_s9  ;;  %p448_p9 = scmp.lt.u32.totalorder %s444_s9, %s609_s0 }
  0x16   :  { %p450_p10 = pnand %p448_p9, %p445_p8 }
  0x18   :  { %453 = shalt.err (!%p450_p10)
}
  0x19   :  { %s454_s14 = scalar_lea.vmem %s20_s21, 64  ;;  %p459_p12 = scmp.lt.s32.totalorder %s20_s21, %s20_s21 }
  0x1a   :  { %p455_p11 = scmp.ne.s32.totalorder %s20_s21, %s454_s14  ;;  %p460_p13 = scmp.lt.s32.totalorder %s454_s14, %s454_s14 }
  0x1c   :  { %p461_p0 = por %p460_p13, %p459_p12 }
  0x1e   :  { %p462_p1 = pnand %p461_p0, %p455_p11 }
  0x20   :  { %465 = shalt.err (!%p462_p1)
}
  0x21   :  { %22 = dma.hbm_to_vmem [thread:$0]  %s609_s0, 64, %s20_s21, [#allocation3]  }
  0x22   :  { %s518_s16 = smov [#allocation7]   ;;  %s466_s20 = scalar_lea.hbm %s613_s4, 2048 }
  0x23   :  { %s42_s17 = sshll.u32 %s518_s16, 4  ;;  %p467_p2 = scmp.ne.s32.totalorder %s613_s4, %s466_s20  ;;  %s43_s17 = int_to_ptr.vmem [resolvable:$true] %s42_s17 }
  0x24   :  { %p470_p3 = scmp.lt.u32.totalorder %s466_s20, %s613_s4 }
  0x26   :  { %p472_p4 = pnand %p470_p3, %p467_p2 }
  0x28   :  { %475 = shalt.err (!%p472_p4)
}
  0x29   :  { %s476_s26 = scalar_lea.vmem %s43_s17, 2048  ;;  %p481_p6 = scmp.lt.s32.totalorder %s43_s17, %s43_s17 }
  0x2a   :  { %p477_p5 = scmp.ne.s32.totalorder %s43_s17, %s476_s26  ;;  %p482_p7 = scmp.lt.s32.totalorder %s476_s26, %s476_s26 }
  0x2c   :  { %p483_p8 = por %p482_p7, %p481_p6 }
  0x2e   :  { %p484_p9 = pnand %p483_p8, %p477_p5 }
  0x30   :  { %487 = shalt.err (!%p484_p9)
}
  0x31   :  { %s519_s0 = smov 128   ;;  %s520_s21 = smov 8  }
  0x32   :  { %48 = dma.hbm_to_vmem [thread:$0]  %s613_s4, 2048, %s43_s17, [#allocation6], %s519_s0, %s519_s0, %s520_s21  }
  0x33   :  { %510 = dma.done.wait [#allocation3], 64  }
  0x34   :  { %511 = vsyncadd [#allocation3], 4294967232 }
  0x35   :  { %512 = dma.done.wait [#allocation6], 2112  }
  0x36   :  { %513 = vsyncadd [#allocation6], 4294965184  ;;  %v521_v0 = vmov 0.0|0.0   ;;  %vm522_vm0 = vmmov 0   ;;  %v523_v1 = vmov 0.0   ;;  %v61_v2 = vld [vmem:[#allocation7] sm:$0xff] }
  0x37   :  { %363 = vmatprep.subr.bf16.mxu0 %v521_v0  ;;  %387 = vmatprep.subr.bf16.mxu1 %v521_v0  ;;  %v62_v3 = vld [vmem:[#allocation7 + $0x8] sm:$0xff]  ;;  %v63_v4 = vld [vmem:[#allocation7 + $0x10] sm:$0xff]  ;;  %v64_v6 = vld [vmem:[#allocation7 + $0x18] sm:$0xff]  ;;  %s524_s7 = smov [#allocation8]  }
  0x38   :  { %325 = vmatprep.mubr.msk.f32.mxu0 %vm522_vm0, %v523_v1  ;;  %360 = vmatprep.mubr.msk.f32.mxu1 %vm522_vm0, %v523_v1  ;;  %v364_v5 = vpack.c.bf16 %v62_v3, %v61_v2  ;;  %v367_v7 = vpack.c.bf16 %v64_v6, %v63_v4  ;;  %v65_v8 = vld [vmem:[#allocation7 + $0x20] sm:$0xff]  ;;  %v66_v9 = vld [vmem:[#allocation7 + $0x28] sm:$0xff]  ;;  %v67_v11 = vld [vmem:[#allocation7 + $0x30] sm:$0xff]  ;;  %s247_s8 = sshll.u32 %s524_s7, 4  ;;  %s248_s8 = int_to_ptr.vmem [resolvable:$true] %s247_s8 }
  0x39   :  { %v370_v10 = vpack.c.bf16 %v66_v9, %v65_v8  ;;  %v68_v12 = vld [vmem:[#allocation7 + $0x38] sm:$0xff]  ;;  %v69_v14 = vld [vmem:[#allocation7 + $0x40] sm:$0xff]  ;;  %v70_v15 = vld [vmem:[#allocation7 + $0x48] sm:$0xff]  ;;  %s488_s9 = scalar_lea.vmem %s248_s8, 64  ;;  %p493_p11 = scmp.lt.s32.totalorder %s248_s8, %s248_s8 }
  0x3a   :  { %365 = vmatpush3.bf16.msra.mxu0 %v364_v5  ;;  %389 = vmatpush3.bf16.msra.mxu1 %v364_v5  ;;  %v373_v13 = vpack.c.bf16 %v68_v12, %v67_v11  ;;  %v376_v16 = vpack.c.bf16 %v70_v15, %v69_v14  ;;  %v71_v17 = vld [vmem:[#allocation7 + $0x50] sm:$0xff]  ;;  %v72_v18 = vld [vmem:[#allocation7 + $0x58] sm:$0xff]  ;;  %v73_v20 = vld [vmem:[#allocation7 + $0x60] sm:$0xff]  ;;  %p489_p10 = scmp.ne.s32.totalorder %s248_s8, %s488_s9  ;;  %p494_p12 = scmp.lt.s32.totalorder %s488_s9, %s488_s9 }
  0x3b   :  { %366 = vmatprep.subr.bf16.mxu0 %v521_v0  ;;  %390 = vmatprep.subr.bf16.mxu1 %v521_v0  ;;  %v379_v19 = vpack.c.bf16 %v72_v18, %v71_v17  ;;  %v74_v21 = vld [vmem:[#allocation7 + $0x68] sm:$0xff]  ;;  %v58_v23 = vld [vmem:[#allocation2] sm:$0xf]  ;;  %v59_v24 = vld [vmem:[#allocation5] sm:$0xf] }
  0x3c   :  { %v382_v22 = vpack.c.bf16 %v74_v21, %v73_v20  ;;  %v75_v25 = vld [vmem:[#allocation7 + $0x70] sm:$0xff]  ;;  %v76_v26 = vld [vmem:[#allocation7 + $0x78] sm:$0xff]  ;;  %v60_v27 = vadd.f32 %v59_v24, %v58_v23  ;;  %p495_p13 = por %p494_p12, %p493_p11 }
  0x3d   :  { %v385_v28 = vpack.c.bf16 %v76_v26, %v75_v25  ;;  %v257_v39 = vld [vmem:[%s611_s2] ss:$0 sm:$0xff] }
  0x3e   :  { %368 = vmatpush3.bf16.msra.mxu0 %v367_v7  ;;  %392 = vmatpush3.bf16.msra.mxu1 %v367_v7  ;;  %v147_v29 = vmul.f32 %v60_v27, %v60_v27  ;;  %v258_v41 = vld [vmem:[%s612_s3] ss:$0 sm:$0xff]  ;;  %p496_p0 = pnand %p495_p13, %p489_p10 }
  0x3f   :  { %369 = vmatprep.subr.bf16.mxu0 %v521_v0  ;;  %393 = vmatprep.subr.bf16.mxu1 %v521_v0 }
  0x42   :  { %371 = vmatpush3.bf16.msra.mxu0 %v370_v10  ;;  %395 = vmatpush3.bf16.msra.mxu1 %v370_v10 }
  0x43   :  { %372 = vmatprep.subr.bf16.mxu0 %v521_v0  ;;  %396 = vmatprep.subr.bf16.mxu1 %v521_v0 }
  0x46   :  { %374 = vmatpush3.bf16.msra.mxu0 %v373_v13  ;;  %398 = vmatpush3.bf16.msra.mxu1 %v373_v13 }
  0x47   :  { %375 = vmatprep.subr.bf16.mxu0 %v521_v0  ;;  %399 = vmatprep.subr.bf16.mxu1 %v521_v0 }
  0x4a   :  { %377 = vmatpush3.bf16.msra.mxu0 %v376_v16  ;;  %401 = vmatpush3.bf16.msra.mxu1 %v376_v16 }
  0x4b   :  { %378 = vmatprep.subr.bf16.mxu0 %v521_v0  ;;  %402 = vmatprep.subr.bf16.mxu1 %v521_v0 }
  0x4e   :  { %380 = vmatpush3.bf16.msra.mxu0 %v379_v19  ;;  %404 = vmatpush3.bf16.msra.mxu1 %v379_v19 }
  0x4f   :  { %381 = vmatprep.subr.bf16.mxu0 %v521_v0  ;;  %405 = vmatprep.subr.bf16.mxu1 %v521_v0 }
  0x52   :  { %383 = vmatpush3.bf16.msra.mxu0 %v382_v22  ;;  %407 = vmatpush3.bf16.msra.mxu1 %v382_v22 }
  0x53   :  { %384 = vmatprep.subr.bf16.mxu0 %v521_v0  ;;  %408 = vmatprep.subr.bf16.mxu1 %v521_v0 }
  0x56   :  { %386 = vmatpush3.bf16.msra.mxu0 %v385_v28  ;;  %410 = vmatpush3.bf16.msra.mxu1 %v385_v28 }
  0x59   :  { %326 = vmatmul.mubr.f32.vlgmr.msra.gmra.mrb[0].mxu0 %v60_v27  ;;  %361 = vmatmul.mubr.f32.vlgmr.msra.gmra.mrb[0].mxu1 %v147_v29 }
 0x12c   :  { %v143_v30 = vpop.f32.mrb[0].mxu0  ;;  %v214_v31 = vpop.f32.mrb[0].mxu1 }
 0x12d   :  { %v218_v32 = vmul.f32 %v143_v30, %v143_v30  ;;  %v327_v33 = vpop.f32.mrb[1].mxu0  ;;  %v362_v34 = vpop.f32.mrb[1].mxu1  ;;  %v222_v37 = vsub.f32 %v60_v27, %v143_v30 }
 0x12f   :  { %v219_v35 = vsub.f32 %v214_v31, %v218_v32 }
 0x131   :  { %v220_v36 = vadd.f32 1e-05, %v219_v35 }
 0x133   :  { %420 = vrsqrt.f32 %v220_v36 }
 0x13d   :  { %v421_v38 = vpop.eup %420 }
 0x13e   :  { %v223_v40 = vmul.f32 %v421_v38, %v222_v37 }
 0x140   :  { %v231_v42 = vmul.f32 %v257_v39, %v223_v40 }
 0x142   :  { %v239_v43 = vadd.f32 %v258_v41, %v231_v42 }
 0x144   :  { %240 = vst [vmem:[#allocation8] sm:$0xf] %v239_v43 }
 0x145   :  { %499 = shalt.err (!%p496_p0)
}
 0x146   :  { %s500_s11 = scalar_lea.hbm %s614_s5, 64 }
 0x147   :  { %p501_p1 = scmp.ne.s32.totalorder %s614_s5, %s500_s11  ;;  %p504_p2 = scmp.lt.u32.totalorder %s500_s11, %s614_s5 }
 0x149   :  { %p506_p3 = pnand %p504_p2, %p501_p1 }
 0x14b   :  { %509 = shalt.err (!%p506_p3)
}
 0x14c   :  { %250 = dma.vmem_to_hbm [thread:$0]  %s248_s8, 64, %s614_s5, [#allocation4]  }
 0x14d   :  { %514 = dma.done.wait [#allocation4], 64  }
 0x14e   :  { %515 = vsyncadd [#allocation4], 4294967232 }
 0x14f   :  { %254 = vsyncpa [#allocation3], 1 }
 0x150   :  { %255 = vsyncpa [#allocation6], 1 }
 0x151   :  { %256 = vsyncpa [#allocation4], 1 }

</bundles_post_ra>
